<compile_context>
chip_gen: v5e
topology: v5e:2x2
jax: 0.10.0
libtpu: 0.0.40
codegen_flags: <defaults>
</compile_context>

<pallas_src>
import functools

import jax
import jax.numpy as jnp
from jax.experimental import pallas as pl
from jax.experimental.pallas import tpu as pltpu


def _linear_sigmoid_kernel(x_ref, w_ref, b_ref, o_ref):
    # x_ref: (tm, Kd) lane-dense input tile (group-folded batch rows)
    # w_ref: (Kd, Nd) block-diagonal kron(I_group, W^T), VMEM-resident
    # b_ref: (1, Nd)  bias tiled `group` times, VMEM-resident
    # o_ref: (tm, Nd) lane-dense output tile
    acc = jnp.dot(x_ref[...], w_ref[...], preferred_element_type=jnp.float32)
    acc = acc + b_ref[...]                      # bias broadcast over batch rows
    o_ref[...] = jax.nn.sigmoid(acc).astype(o_ref.dtype)


@functools.partial(jax.jit, static_argnames=("vmem_budget_bytes",))
def minimal_model_forward(x, w, b, *, vmem_budget_bytes=24 * 1024 * 1024):
    """x: (B, inp_size), w: (out_size, inp_size) [PyTorch layout], b: (out_size,)."""
    B, K = x.shape
    N, K2 = w.shape
    assert K == K2, "weight inner dim must match input feature dim"
    dtype = x.dtype
    itemsize = jnp.dtype(dtype).itemsize

    # --- lane-dense group fold: pack `group` batch rows per kernel row so the
    # output row is exactly 128 lanes (and the input row a multiple of 128).
    group = 128 // N if (0 < N <= 128 and 128 % N == 0) else 1
    B_pad = ((B + group - 1) // group) * group
    if B_pad != B:
        x = jnp.pad(x, ((0, B_pad - B), (0, 0)))
    rows = B_pad // group
    Kd, Nd = group * K, group * N

    # One-time parameter repack (tiny XLA ops, executed once outside the grid;
    # guarantees no per-grid-step transpose of a trans-B weight inside the kernel).
    wt = w.T.astype(dtype)                                   # (K, N)
    if group > 1:
        w_d = jnp.kron(jnp.eye(group, dtype=dtype), wt)       # (Kd, Nd) block-diag
        b_d = jnp.tile(b.astype(dtype), group).reshape(1, Nd)
    else:
        w_d = wt
        b_d = b.astype(dtype).reshape(1, Nd)
    x_d = x.reshape(rows, Kd)                                  # free row-major reshape

    # --- batch-tile size from the VMEM byte budget (double-buffered in + out).
    bytes_per_row = 2 * Kd * itemsize + 2 * Nd * itemsize
    tm_cap = max(8, (vmem_budget_bytes // bytes_per_row) // 8 * 8)
    if rows > tm_cap:
        tm = tm_cap                                # many 8-aligned steps
    elif rows >= 2048:
        tm = ((rows + 1) // 2 + 7) // 8 * 8        # >=2 steps -> v7x megacore
    else:
        tm = rows                                  # single step (small batch)
    grid = (pl.cdiv(rows, tm),)

    cost = pl.CostEstimate(
        flops=2 * rows * Kd * Nd,
        transcendentals=rows * Nd,                 # one exp per sigmoid output
        bytes_accessed=(rows * Kd + Kd * Nd + Nd + rows * Nd) * itemsize,
    )

    out = pl.pallas_call(
        _linear_sigmoid_kernel,
        out_shape=jax.ShapeDtypeStruct((rows, Nd), dtype),
        grid_spec=pl.GridSpec(
            grid=grid,
            in_specs=[
                pl.BlockSpec((tm, Kd), lambda i: (i, 0)),   # batch-tiled, lane-dense
                pl.BlockSpec((Kd, Nd), lambda i: (0, 0)),   # weights, VMEM-resident
                pl.BlockSpec((1, Nd), lambda i: (0, 0)),    # bias, VMEM-resident
            ],
            out_specs=pl.BlockSpec((tm, Nd), lambda i: (i, 0)),  # lane-dense output
        ),
        compiler_params=pltpu.CompilerParams(
            dimension_semantics=("parallel",),
            vmem_limit_bytes=32 * 1024 * 1024,     # v5e default is 16 MiB; raise it
        ),
        cost_estimate=cost,
    )(x_d, w_d, b_d)

    y = out.reshape(B_pad, N)                      # free reshape back to (B_pad, N)
    if B_pad != B:
        y = y[:B]
    return y


if __name__ == "__main__":
    # Small shapes consistent with the module: batch=8, inp_size=32, out_size=16
    batch, inp_size, out_size = 8, 32, 16
    key = jax.random.PRNGKey(0)
    kx, kw, kb = jax.random.split(key, 3)

    # Deterministic parameter init mimicking nn.Linear's U(-1/sqrt(in), 1/sqrt(in))
    bound = 1.0 / (inp_size ** 0.5)
    w = jax.random.uniform(kw, (out_size, inp_size), jnp.float32, -bound, bound)
    b = jax.random.uniform(kb, (out_size,), jnp.float32, -bound, bound)
    x = jax.random.normal(kx, (batch, inp_size), jnp.float32)

    y = minimal_model_forward(x, w, b)
    jax.block_until_ready(y)

    # Reference check against plain JAX
    y_ref = jax.nn.sigmoid(x @ w.T + b)
    assert y.shape == (batch, out_size)
    assert jnp.allclose(y, y_ref, atol=1e-5, rtol=1e-5)

    print("KERNEL_OK")
</pallas_src>

<mosaic_0001>
module attributes {stable_mosaic.version = 11 : i64} {
  func.func @_linear_sigmoid_kernel(%arg0: i32, %arg1: memref<1x256xf32, #tpu.memory_space<vmem>>, %arg2: memref<256x128xf32, #tpu.memory_space<vmem>>, %arg3: memref<1x128xf32, #tpu.memory_space<vmem>>, %arg4: memref<1x128xf32, #tpu.memory_space<vmem>>) attributes {dimension_semantics = [#tpu.dimension_semantics<parallel>], iteration_bounds = array<i64: 1>, scalar_prefetch = 0 : i64, scratch_operands = 0 : i64, tpu.core_type = #tpu.core_type<tc>, window_params = [{transform_indices = @transform_0, window_bounds = array<i64: 1, 256>}, {pipeline_mode = #tpu.pipeline_mode<synchronous>, transform_indices = @transform_1, window_bounds = array<i64: 256, 128>}, {pipeline_mode = #tpu.pipeline_mode<synchronous>, transform_indices = @transform_2, window_bounds = array<i64: 1, 128>}, {transform_indices = @transform_3, window_bounds = array<i64: 1, 128>}]} {
    %c0 = arith.constant 0 : index
    %c0_0 = arith.constant 0 : index
    %0 = vector.load %arg1[%c0, %c0_0] : memref<1x256xf32, #tpu.memory_space<vmem>>, vector<1x256xf32>
    %c0_1 = arith.constant 0 : index
    %c0_2 = arith.constant 0 : index
    %1 = vector.load %arg2[%c0_1, %c0_2] : memref<256x128xf32, #tpu.memory_space<vmem>>, vector<256x128xf32>
    %cst = arith.constant dense<0.000000e+00> : vector<1x128xf32>
    %2 = tpu.matmul %0, %1, %cst {dimension_numbers = #tpu.dot_dimension_numbers<[1], [0], [0], [1], [0, 0, 1, 1], [], []>} : vector<1x256xf32>, vector<256x128xf32>, vector<1x128xf32> -> vector<1x128xf32>
    %c0_3 = arith.constant 0 : index
    %c0_4 = arith.constant 0 : index
    %3 = vector.load %arg3[%c0_3, %c0_4] : memref<1x128xf32, #tpu.memory_space<vmem>>, vector<1x128xf32>
    %4 = arith.addf %2, %3 : vector<1x128xf32>
    %5 = arith.negf %4 : vector<1x128xf32>
    %6 = math.exp %5 : vector<1x128xf32>
    %cst_5 = arith.constant 1.000000e+00 : f32
    %7 = vector.broadcast %cst_5 : f32 to vector<1x128xf32>
    %8 = arith.addf %7, %6 : vector<1x128xf32>
    %9 = arith.divf %7, %8 : vector<1x128xf32>
    %c0_6 = arith.constant 0 : index
    %c0_7 = arith.constant 0 : index
    %10 = vector.load %arg4[%c0_6, %c0_7] : memref<1x128xf32, #tpu.memory_space<vmem>>, vector<1x128xf32>
    tpu.vector_store %arg4[%c0_6, %c0_7], %9 {strides = array<i32>} : memref<1x128xf32, #tpu.memory_space<vmem>>, vector<1x128xf32>,
    return
  }
  func.func @transform_0(%arg0: i32) -> (i32, i32) {
    %c0_i32 = arith.constant 0 : i32
    %c0_i32_0 = arith.constant 0 : i32
    return %arg0, %c0_i32 : i32, i32
  }
  func.func @transform_1(%arg0: i32) -> (i32, i32) {
    %c0_i32 = arith.constant 0 : i32
    %c0_i32_0 = arith.constant 0 : i32
    %c0_i32_1 = arith.constant 0 : i32
    return %c0_i32, %c0_i32_0 : i32, i32
  }
  func.func @transform_2(%arg0: i32) -> (i32, i32) {
    %c0_i32 = arith.constant 0 : i32
    %c0_i32_0 = arith.constant 0 : i32
    %c0_i32_1 = arith.constant 0 : i32
    return %c0_i32, %c0_i32_0 : i32, i32
  }
  func.func @transform_3(%arg0: i32) -> (i32, i32) {
    %c0_i32 = arith.constant 0 : i32
    %c0_i32_0 = arith.constant 0 : i32
    return %arg0, %c0_i32 : i32, i32
  }
}

</mosaic_0001>

<bundles_post_ra>
// kernel: tile.8
= control target key start
LH: loop header
LB: loop body
LE: loop exit
PB: predicated region body
PF: predicated region fallthrough
CT: control target
= control target key end

     0   :  { %s22_s0 = inlined_call_operand.vmem [shape: f32[16], index: 0, kind: input, shape index: {}]   ;;  %s23_s1 = inlined_call_operand.vmem [shape: f32[8,16], index: 1, kind: output, shape index: {}]  }
   0x1   :  { %v4_v0 = vld [vmem:[%s22_s0] ss:$0 sm:$0xff] }
   0x2   :  { %5 = vst [vmem:[%s23_s1] sm:$0xff] %v4_v0 }

// kernel: tile.9
= control target key start
LH: loop header
LB: loop body
LE: loop exit
PB: predicated region body
PF: predicated region fallthrough
CT: control target
= control target key end

     0   :  { %s67_s10 = smov 112   ;;  %s68_s11 = smov 80   ;;  %vm3_vm0 = vcmask 130048   ;;  %vm9_vm1 = vcmask 1048448   ;;  %vm15_vm2 = vcmask 917248   ;;  %vm21_vm3 = vcmask 786048   ;;  %s111_s0 = inlined_call_operand.vmem [shape: f32[8,16], index: 0, kind: input, shape index: {}]   ;;  %s112_s1 = inlined_call_operand.vmem [shape: f32[1,128], index: 1, kind: output, shape index: {}]  }
   0x1   :  { %v53_v0 = vld [vmem:[%s111_s0 + $0x7] sm:$0x1]   ;;  %v55_v1 = vld [vmem:[%s111_s0 + $0x5] sm:$0x1]   ;;  %v57_v2 = vld [vmem:[%s111_s0 + $0x3] sm:$0x1]  }
   0x2   :  { %7 = vrot.lane.b32.xlu0 %v53_v0, %s67_s10  ;;  %19 = vrot.lane.b32.xlu1 %v55_v1, %s68_s11  ;;  %s69_s14 = smov 48   ;;  %v54_v3 = vld [vmem:[%s111_s0 + $0x6] sm:$0x1]   ;;  %v56_v4 = vld [vmem:[%s111_s0 + $0x4] sm:$0x1]   ;;  %s70_s21 = smov 96  }
   0x3   :  { %31 = vrot.lane.b32.xlu2 %v57_v2, %s69_s14  ;;  %v58_v5 = vld [vmem:[%s111_s0 + $0x2] sm:$0x1]   ;;  %s71_s22 = smov 64   ;;  %s72_s23 = smov 32   ;;  %v59_v6 = vld [vmem:[%s111_s0 + $0x1] sm:$0x1]  }
   0x4   :  { %s73_s26 = smov 16   ;;  %v2_v7 = vld [vmem:[%s111_s0] sm:$0x1]   ;;  %vm27_vm4 = vcmask 654848   ;;  %vm33_vm5 = vcmask 523648   ;;  %vm39_vm6 = vcmask 392448  }
   0x5   :  { %4 = vst.msk [vmem:[#allocation0] sm:$0x1] %vm3_vm0, %v2_v7   ;;  %vm45_vm7 = vcmask 261248  }
   0xa   :  { %13 = vrot.lane.b32.xlu0 %v54_v3, %s70_s21  ;;  %25 = vrot.lane.b32.xlu1 %v56_v4, %s71_s22 }
   0xb   :  { %37 = vrot.lane.b32.xlu2 %v58_v5, %s72_s23 }
  0x12   :  { %43 = vrot.lane.b32.xlu0 %v59_v6, %s73_s26 }
  0x5d   :  { %v32_v8 = vpop.permute.xlu2 %31  }
  0x65   :  { %v38_v9 = vpop.permute.xlu2 %37  }
  0x74   :  { %v8_v10 = vpop.permute.xlu0 %7   ;;  %v20_v11 = vpop.permute.xlu1 %19  }
  0x75   :  { %10 = vst.msk [vmem:[#allocation0] sm:$0x1] %vm9_vm1, %v8_v10  }
  0x7c   :  { %v14_v12 = vpop.permute.xlu0 %13   ;;  %v26_v13 = vpop.permute.xlu1 %25  }
  0x7d   :  { %16 = vst.msk [vmem:[#allocation0] sm:$0x1] %vm15_vm2, %v14_v12  }
  0x7e   :  { %22 = vst.msk [vmem:[#allocation0] sm:$0x1] %vm21_vm3, %v20_v11  }
  0x7f   :  { %28 = vst.msk [vmem:[#allocation0] sm:$0x1] %vm27_vm4, %v26_v13  }
  0x80   :  { %34 = vst.msk [vmem:[#allocation0] sm:$0x1] %vm33_vm5, %v32_v8  }
  0x81   :  { %40 = vst.msk [vmem:[#allocation0] sm:$0x1] %vm39_vm6, %v38_v9  }
  0x84   :  { %v44_v14 = vpop.permute.xlu0 %43  }
  0x85   :  { %46 = vst.msk [vmem:[#allocation0] sm:$0x1] %vm45_vm7, %v44_v14  }
  0x8c   :  { %v49_v15 = vld [vmem:[#allocation0] sm:$0x1] }
  0x8d   :  { %52 = vst [vmem:[%s112_s1] sm:$0x1] %v49_v15 }

// kernel: minimal_model_forward.1
= control target key start
LH: loop header
LB: loop body
LE: loop exit
PB: predicated region body
PF: predicated region fallthrough
CT: control target
= control target key end

     0   :  { %s247_s1 = inlined_call_operand.vmem [shape: f32[256,128], index: 1, kind: input, shape index: {}]   ;;  %s248_s0 = inlined_call_operand.vmem [shape: f32[1,256], index: 0, kind: input, shape index: {}]   ;;  %s249_s2 = inlined_call_operand.vmem [shape: f32[1,128], index: 2, kind: input, shape index: {}]   ;;  %s250_s3 = inlined_call_operand.vmem [shape: f32[1,128], index: 3, kind: output, shape index: {}]  }
   0x1   :  { %v30_v0 = vld [vmem:[%s247_s1 + $0x78] sm:$0xff]  ;;  %v29_v1 = vld [vmem:[%s247_s1 + $0x70] sm:$0xff]  ;;  %v28_v4 = vld [vmem:[%s247_s1 + $0x68] sm:$0xff] }
   0x2   :  { %v46_v2 = vld [vmem:[%s247_s1 + $0xf8] sm:$0xff]  ;;  %53 = vmatpush.msra.mxu0 %v30_v0  ;;  %v45_v3 = vld [vmem:[%s247_s1 + $0xf0] sm:$0xff]  ;;  %v44_v5 = vld [vmem:[%s247_s1 + $0xe8] sm:$0xff] }
   0x3   :  { %73 = vmatpush.msra.mxu1 %v46_v2  ;;  %v27_v6 = vld [vmem:[%s247_s1 + $0x60] sm:$0xff]  ;;  %v26_v8 = vld [vmem:[%s247_s1 + $0x58] sm:$0xff]  ;;  %v25_v10 = vld [vmem:[%s247_s1 + $0x50] sm:$0xff] }
   0x4   :  { %54 = vmatpush.msra.mxu0 %v29_v1  ;;  %v43_v7 = vld [vmem:[%s247_s1 + $0xe0] sm:$0xff]  ;;  %v42_v9 = vld [vmem:[%s247_s1 + $0xd8] sm:$0xff]  ;;  %v41_v11 = vld [vmem:[%s247_s1 + $0xd0] sm:$0xff] }
   0x5   :  { %74 = vmatpush.msra.mxu1 %v45_v3  ;;  %v24_v12 = vld [vmem:[%s247_s1 + $0x48] sm:$0xff]  ;;  %v23_v14 = vld [vmem:[%s247_s1 + $0x40] sm:$0xff]  ;;  %v22_v16 = vld [vmem:[%s247_s1 + $0x38] sm:$0xff] }
   0x6   :  { %55 = vmatpush.msra.mxu0 %v28_v4  ;;  %v40_v13 = vld [vmem:[%s247_s1 + $0xc8] sm:$0xff]  ;;  %v39_v15 = vld [vmem:[%s247_s1 + $0xc0] sm:$0xff]  ;;  %v38_v17 = vld [vmem:[%s247_s1 + $0xb8] sm:$0xff] }
   0x7   :  { %75 = vmatpush.msra.mxu1 %v44_v5  ;;  %v21_v18 = vld [vmem:[%s247_s1 + $0x30] sm:$0xff]  ;;  %v20_v20 = vld [vmem:[%s247_s1 + $0x28] sm:$0xff]  ;;  %v19_v22 = vld [vmem:[%s247_s1 + $0x20] sm:$0xff] }
   0x8   :  { %56 = vmatpush.msra.mxu0 %v27_v6  ;;  %v37_v19 = vld [vmem:[%s247_s1 + $0xb0] sm:$0xff]  ;;  %v36_v21 = vld [vmem:[%s247_s1 + $0xa8] sm:$0xff]  ;;  %v35_v23 = vld [vmem:[%s247_s1 + $0xa0] sm:$0xff] }
   0x9   :  { %76 = vmatpush.msra.mxu1 %v43_v7  ;;  %v18_v24 = vld [vmem:[%s247_s1 + $0x18] sm:$0xff]  ;;  %v17_v26 = vld [vmem:[%s247_s1 + $0x10] sm:$0xff]  ;;  %v14_v28 = vld [vmem:[%s248_s0] sm:$0x3] }
   0xa   :  { %57 = vmatpush.msra.mxu0 %v26_v8  ;;  %v34_v25 = vld [vmem:[%s247_s1 + $0x98] sm:$0xff]  ;;  %v33_v27 = vld [vmem:[%s247_s1 + $0x90] sm:$0xff]  ;;  %v16_v29 = vld [vmem:[%s247_s1 + $0x8] sm:$0xff]  ;;  %v49_v32 = vperm.slane %v14_v28, 0  ;;  %v50_v34 = vperm.slane %v14_v28, 1 }
   0xb   :  { %77 = vmatpush.msra.mxu1 %v42_v9  ;;  %v32_v30 = vld [vmem:[%s247_s1 + $0x88] sm:$0xff]  ;;  %v15_v31 = vld [vmem:[%s247_s1] sm:$0xff] }
   0xc   :  { %58 = vmatpush.msra.mxu0 %v25_v10  ;;  %v31_v33 = vld [vmem:[%s247_s1 + $0x80] sm:$0xff] }
   0xd   :  { %78 = vmatpush.msra.mxu1 %v41_v11  ;;  %v47_v35 = vld [vmem:[%s249_s2] sm:$0x1] }
   0xe   :  { %59 = vmatpush.msra.mxu0 %v24_v12 }
   0xf   :  { %79 = vmatpush.msra.mxu1 %v40_v13 }
  0x10   :  { %60 = vmatpush.msra.mxu0 %v23_v14 }
  0x11   :  { %80 = vmatpush.msra.mxu1 %v39_v15 }
  0x12   :  { %61 = vmatpush.msra.mxu0 %v22_v16 }
  0x13   :  { %81 = vmatpush.msra.mxu1 %v38_v17 }
  0x14   :  { %62 = vmatpush.msra.mxu0 %v21_v18 }
  0x15   :  { %82 = vmatpush.msra.mxu1 %v37_v19 }
  0x16   :  { %63 = vmatpush.msra.mxu0 %v20_v20 }
  0x17   :  { %83 = vmatpush.msra.mxu1 %v36_v21 }
  0x18   :  { %64 = vmatpush.msra.mxu0 %v19_v22 }
  0x19   :  { %84 = vmatpush.msra.mxu1 %v35_v23 }
  0x1a   :  { %65 = vmatpush.msra.mxu0 %v18_v24 }
  0x1b   :  { %85 = vmatpush.msra.mxu1 %v34_v25 }
  0x1c   :  { %66 = vmatpush.msra.mxu0 %v17_v26 }
  0x1d   :  { %86 = vmatpush.msra.mxu1 %v33_v27 }
  0x1e   :  { %67 = vmatpush.msra.mxu0 %v16_v29 }
  0x1f   :  { %87 = vmatpush.msra.mxu1 %v32_v30 }
  0x20   :  { %68 = vmatpush.msra.mxu0 %v15_v31 }
  0x21   :  { %88 = vmatpush.msra.mxu1 %v31_v33  ;;  %69 = vmatmul.f32.vlgmr.msra.gmra.mxu0 %v49_v32 }
  0x22   :  { %89 = vmatmul.f32.vlgmr.msra.gmra.mxu1 %v50_v34 }
  0x9e   :  { %v70_v36 = vpop.f32.mrf.mxu0 }
  0x9f   :  { %v90_v37 = vpop.f32.mrf.mxu1  ;;  %v71_v38 = vadd.f32 %v70_v36, %v47_v35 }
  0xa1   :  { %v91_v39 = vadd.f32 %v90_v37, %v71_v38 }
  0xa3   :  { %v117_v40 = vmul.f32 -1.442695, %v91_v39 }
  0xa5   :  { %118 = vpow2.f32 %v117_v40 }
  0xab   :  { %v119_v41 = vpop.eup %118 }
  0xac   :  { %v96_v42 = vadd.f32 1.0, %v119_v41 }
  0xae   :  { %120 = vrcp.f32 %v96_v42  ;;  %v108_v46 = vand.u32 2147483648, %v96_v42  ;;  %v106_v48 = vand.u32 2147483647, %v96_v42  ;;  %vm102_vm1 = vweird.f32 %v96_v42 }
  0xb0   :  { %v109_v50 = vor.u32 1.1754944e-38, %v108_v46  ;;  %vm107_vm3 = vcmp.eq.f32.partialorder %v106_v48, 8.507059e+37 }
  0xb4   :  { %v121_v43 = vpop.eup %120 }
  0xb5   :  { %v98_v44 = vmul.f32 %v121_v43, %v96_v42  ;;  %vm103_vm0 = vweird.f32 %v121_v43 }
  0xb6   :  { %vm104_vm2 = vmor %vm102_vm1, %vm103_vm0 }
  0xb7   :  { %v99_v45 = vsub.f32 1.0, %v98_v44 }
  0xb9   :  { %v100_v47 = vmul.f32 %v121_v43, %v99_v45 }
  0xbb   :  { %v101_v49 = vadd.f32 %v121_v43, %v100_v47 }
  0xbd   :  { %v105_v51 = vsel %vm104_vm2, %v121_v43, %v101_v49 }
  0xbe   :  { %v110_v52 = vsel %vm107_vm3, %v109_v50, %v105_v51 }
  0xbf   :  { %112 = vst [vmem:[%s250_s3] sm:$0x1] %v110_v52 }

</bundles_post_ra>
